<compile_context>
chip_gen: v7x
topology: tpu7x:2x2x1
jax: 0.10.0
libtpu: 0.0.40
codegen_flags: <defaults>
</compile_context>

<pallas_src>
import math
import jax
import jax.numpy as jnp
from jax import lax
from jax.experimental import pallas as pl
from jax.experimental.pallas import tpu as pltpu

VMEM_SPEC = pl.BlockSpec(memory_space=pltpu.MemorySpace.VMEM)
VMEM_LIMIT = 32 * 1024 * 1024  # legal on v5e / v6e / v7x scoped-VMEM budgets


# ----------------------------- Pallas kernels ------------------------------

def _conv0_kernel(p_ref, w_ref, b_ref, o_ref):
    # p: (bm, Kd) bf16, w: (Kd, C0) bf16, b: (1, C0) f32 -> o: (bm, C0) bf16
    y = jnp.dot(p_ref[...], w_ref[...], preferred_element_type=jnp.float32)
    o_ref[...] = (y + b_ref[...]).astype(o_ref.dtype)


def _conv_bn_lrelu_kernel(p_ref, w_ref, g_ref, b_ref, o_ref):
    # conv-as-matmul (bf16 in, f32 acc) -> BatchNorm2d (training-mode batch
    # stats over all M = N*H*W rows, eps=1e-5, biased var) -> LeakyReLU(0.2).
    # Stats over the whole M are correct because this kernel sees the full
    # (un-gridded) activation; see TODO(synk) above for the tiled variant.
    y = jnp.dot(p_ref[...], w_ref[...], preferred_element_type=jnp.float32)
    mean = jnp.mean(y, axis=0, keepdims=True)
    var = jnp.mean(jnp.square(y - mean), axis=0, keepdims=True)
    z = (y - mean) * lax.rsqrt(var + 1e-5) * g_ref[...] + b_ref[...]
    o_ref[...] = jnp.where(z >= 0.0, z, 0.2 * z).astype(o_ref.dtype)


def _last_block_head_kernel(p_ref, w_ref, g_ref, b_ref, o_ref):
    # Fused: last conv block (conv -> BN -> LeakyReLU) + AvgPool2d(2) over the
    # final 2x2 map + view(-1, C) + mean over channels + Sigmoid.
    y = jnp.dot(p_ref[...], w_ref[...], preferred_element_type=jnp.float32)  # (M, C)
    mean = jnp.mean(y, axis=0, keepdims=True)
    var = jnp.mean(jnp.square(y - mean), axis=0, keepdims=True)
    z = (y - mean) * lax.rsqrt(var + 1e-5) * g_ref[...] + b_ref[...]
    z = jnp.where(z >= 0.0, z, 0.2 * z)                                      # (M, C)

    M = z.shape[0]
    B = o_ref.shape[0]
    HW = M // B  # spatial positions per batch element (2*2 by construction)
    # Per-batch spatial average via a tiny pooling matmul (rows are NHWC
    # flattened, so rows [b*HW, (b+1)*HW) belong to batch b).  Avoids an
    # in-kernel reshape across the sublane dim.
    rows = lax.broadcasted_iota(jnp.int32, (B, M), 1)
    bidx = lax.broadcasted_iota(jnp.int32, (B, M), 0)
    pool = jnp.where(rows // HW == bidx, 1.0, 0.0)
    pooled = jnp.dot(pool, z, preferred_element_type=jnp.float32) * (1.0 / HW)  # (B, C)
    m = jnp.mean(pooled, axis=1, keepdims=True)                                 # (B, 1)
    # sigmoid with the divide routed to the EUP
    o_ref[...] = pl.reciprocal(1.0 + jnp.exp(-m), approx=True)


# --------------------------- pallas_call wrappers ---------------------------

def conv0_pallas(patches, w, b, *, block_m=256):
    M, Kd = patches.shape
    C = w.shape[1]
    block_m = min(block_m, M)
    return pl.pallas_call(
        _conv0_kernel,
        out_shape=jax.ShapeDtypeStruct((M, C), jnp.bfloat16),
        grid_spec=pltpu.PrefetchScalarGridSpec(
            num_scalar_prefetch=0,
            grid=(pl.cdiv(M, block_m),),
            in_specs=[
                pl.BlockSpec((block_m, Kd), lambda i: (i, 0)),
                pl.BlockSpec((Kd, C), lambda i: (0, 0)),
                pl.BlockSpec((1, C), lambda i: (0, 0)),
            ],
            out_specs=pl.BlockSpec((block_m, C), lambda i: (i, 0)),
        ),
        compiler_params=pltpu.CompilerParams(
            dimension_semantics=("parallel",),
            vmem_limit_bytes=VMEM_LIMIT,
        ),
    )(patches, w, b)


def conv_bn_lrelu_pallas(patches, w, gamma, beta):
    M = patches.shape[0]
    C = w.shape[1]
    return pl.pallas_call(
        _conv_bn_lrelu_kernel,
        out_shape=jax.ShapeDtypeStruct((M, C), jnp.bfloat16),
        in_specs=[VMEM_SPEC, VMEM_SPEC, VMEM_SPEC, VMEM_SPEC],
        out_specs=VMEM_SPEC,
        compiler_params=pltpu.CompilerParams(vmem_limit_bytes=VMEM_LIMIT),
    )(patches, w, gamma, beta)


def last_block_head_pallas(patches, w, gamma, beta, batch):
    return pl.pallas_call(
        _last_block_head_kernel,
        out_shape=jax.ShapeDtypeStruct((batch, 1), jnp.float32),
        in_specs=[VMEM_SPEC, VMEM_SPEC, VMEM_SPEC, VMEM_SPEC],
        out_specs=VMEM_SPEC,
        compiler_params=pltpu.CompilerParams(vmem_limit_bytes=VMEM_LIMIT),
    )(patches, w, gamma, beta)


# ------------------------------ JAX glue ------------------------------------

def im2col_nhwc(x, K, stride, pad):
    """x: (B, H, W, C) -> patches (B*Ho*Wo, K*K*C), element order (kh, kw, c).
    Transpose-free: only pad / strided-slice / concat / reshape."""
    B, H, W, C = x.shape
    x_pad = jnp.pad(x, ((0, 0), (pad, pad), (pad, pad), (0, 0)))
    Ho = (H + 2 * pad - K) // stride + 1
    Wo = (W + 2 * pad - K) // stride + 1
    cols = []
    for kh in range(K):
        for kw in range(K):
            cols.append(
                x_pad[:, kh:kh + stride * Ho:stride, kw:kw + stride * Wo:stride, :]
            )  # (B, Ho, Wo, C)
    patches = jnp.concatenate(cols, axis=-1)             # (B, Ho, Wo, K*K*C)
    return patches.reshape(B * Ho * Wo, K * K * C), Ho, Wo


def init_params(key, max_resolution, n_channels, max_channels, min_channels):
    """Parameters in the PyTorch layout (OIHW weights)."""
    num_blocks = int(math.log2(max_resolution)) - 1
    c0 = max(min_channels, max_channels // 2 ** num_blocks)
    key, k1, k2 = jax.random.split(key, 3)
    params = {
        "conv0_w": 0.05 * jax.random.normal(k1, (c0, n_channels, 3, 3), jnp.float32),
        "conv0_b": 0.05 * jax.random.normal(k2, (c0,), jnp.float32),
        "blocks": [],
    }
    for i in range(num_blocks):
        in_ = max_channels // 2 ** (num_blocks - i)
        if in_ < min_channels:
            in_ = min_channels
            out_ = min_channels
        else:
            out_ = in_ * 2
        key, kw, kg, kb = jax.random.split(key, 4)
        w = 0.05 * jax.random.normal(kw, (out_, in_, 4, 4), jnp.float32)
        gamma = 1.0 + 0.1 * jax.random.normal(kg, (out_,), jnp.float32)
        beta = 0.1 * jax.random.normal(kb, (out_,), jnp.float32)
        params["blocks"].append((w, gamma, beta))
    return params


def prepare_pallas_params(params):
    """One-time reshape / pad / cast of the weights into matmul layout.

    OIHW (Cout, Cin, K, K) -> (K*K*Cin, Cout) in (kh, kw, ci) order to match
    the NHWC im2col patch ordering; conv0's 27-wide K dim is padded to a
    multiple of 8 (32) with zeros; matmul operands are bf16, BN affine in f32.
    """
    w0 = params["conv0_w"]                                   # (C0, Cin, 3, 3)
    c0 = w0.shape[0]
    w0m = w0.transpose(2, 3, 1, 0).reshape(-1, c0)           # (27, C0)
    kd_pad = ((w0m.shape[0] + 7) // 8) * 8                   # 27 -> 32
    w0m = jnp.pad(w0m, ((0, kd_pad - w0m.shape[0]), (0, 0)))
    pp = {
        "conv0_w": w0m.astype(jnp.bfloat16),
        "conv0_b": params["conv0_b"].reshape(1, -1).astype(jnp.float32),
        "conv0_kd": kd_pad,
        "blocks": [],
    }
    for (w, g, b) in params["blocks"]:
        co = w.shape[0]
        wm = w.transpose(2, 3, 1, 0).reshape(-1, co).astype(jnp.bfloat16)
        pp["blocks"].append(
            (wm, g.reshape(1, -1).astype(jnp.float32), b.reshape(1, -1).astype(jnp.float32))
        )
    return pp


def discriminator_forward(image, pparams, cfg):
    R, C_in = cfg["max_resolution"], cfg["n_channels"]
    x = image.reshape(-1, C_in, R, R)                        # image.view(-1, C, R, R)
    B = x.shape[0]
    # Single layout change on the (tiny) input: NCHW -> NHWC, bf16 activations.
    x = x.transpose(0, 2, 3, 1).astype(jnp.bfloat16)         # (B, R, R, Cin)

    # conv0: 3x3 / s1 / p1 + bias (no BN / activation), M-gridded & parallel.
    p, Ho, Wo = im2col_nhwc(x, 3, 1, 1)                      # (B*R*R, 27)
    p = jnp.pad(p, ((0, 0), (0, pparams["conv0_kd"] - p.shape[1])))
    y = conv0_pallas(p, pparams["conv0_w"], pparams["conv0_b"])
    x = y.reshape(B, Ho, Wo, -1)                             # NHWC, no transpose

    # All but the last strided block: fused conv + BN + LeakyReLU kernels.
    blocks = pparams["blocks"]
    for (wm, g, b) in blocks[:-1]:
        p, Ho, Wo = im2col_nhwc(x, 4, 2, 1)
        y = conv_bn_lrelu_pallas(p, wm, g, b)
        x = y.reshape(B, Ho, Wo, -1)

    # Last block fused with AvgPool2d(2) + view(-1, C) + mean + Sigmoid head.
    wm, g, b = blocks[-1]
    p, Ho, Wo = im2col_nhwc(x, 4, 2, 1)
    return last_block_head_pallas(p, wm, g, b, B)            # (B, 1) f32


# ------------------------------ reference -----------------------------------

def ref_forward(image, params, cfg):
    R, C_in = cfg["max_resolution"], cfg["n_channels"]
    x = image.reshape(-1, C_in, R, R)
    B = x.shape[0]
    dn = ("NCHW", "OIHW", "NCHW")
    y = lax.conv_general_dilated(
        x, params["conv0_w"], (1, 1), [(1, 1), (1, 1)],
        dimension_numbers=dn, precision=lax.Precision.HIGHEST,
    ) + params["conv0_b"][None, :, None, None]
    for (w, g, b) in params["blocks"]:
        y = lax.conv_general_dilated(
            y, w, (2, 2), [(1, 1), (1, 1)],
            dimension_numbers=dn, precision=lax.Precision.HIGHEST,
        )
        mean = jnp.mean(y, axis=(0, 2, 3), keepdims=True)
        var = jnp.mean((y - mean) ** 2, axis=(0, 2, 3), keepdims=True)
        y = (y - mean) * lax.rsqrt(var + 1e-5) * g[None, :, None, None] + b[None, :, None, None]
        y = jnp.where(y >= 0, y, 0.2 * y)
    pooled = jnp.mean(y.reshape(B, y.shape[1], -1), axis=2)  # AvgPool2d(2) on 2x2
    return jax.nn.sigmoid(jnp.mean(pooled, axis=1, keepdims=True))


if __name__ == "__main__":
    cfg = dict(max_resolution=16, n_channels=3, max_channels=64, min_channels=8)
    key = jax.random.PRNGKey(0)
    kx, kp = jax.random.split(key)
    params = init_params(kp, **cfg)
    pparams = prepare_pallas_params(params)
    image = jax.random.normal(
        kx, (2, cfg["n_channels"], cfg["max_resolution"], cfg["max_resolution"]),
        jnp.float32,
    )

    out = jax.block_until_ready(discriminator_forward(image, pparams, cfg))
    ref = jax.block_until_ready(ref_forward(image, params, cfg))

    assert out.shape == (2, 1), out.shape
    assert bool(jnp.all(jnp.isfinite(out)))
    # bf16 matmuls / activations with f32 accumulation vs. f32 reference.
    assert float(jnp.max(jnp.abs(out - ref))) < 2e-2
    print("KERNEL_OK")
</pallas_src>

<mosaic_0001>
module attributes {stable_mosaic.version = 11 : i64} {
  func.func @_conv0_kernel(%arg0: i32, %arg1: memref<256x32xbf16, #tpu.memory_space<vmem>>, %arg2: memref<32x8xbf16, #tpu.memory_space<vmem>>, %arg3: memref<1x8xf32, #tpu.memory_space<vmem>>, %arg4: memref<256x8xbf16, #tpu.memory_space<vmem>>) attributes {dimension_semantics = [#tpu.dimension_semantics<parallel>], iteration_bounds = array<i64: 2>, scalar_prefetch = 0 : i64, scratch_operands = 0 : i64, tpu.core_type = #tpu.core_type<tc>, window_params = [{transform_indices = @transform_0, window_bounds = array<i64: 256, 32>}, {pipeline_mode = #tpu.pipeline_mode<synchronous>, transform_indices = @transform_1, window_bounds = array<i64: 32, 8>}, {pipeline_mode = #tpu.pipeline_mode<synchronous>, transform_indices = @transform_2, window_bounds = array<i64: 1, 8>}, {transform_indices = @transform_3, window_bounds = array<i64: 256, 8>}]} {
    %c0 = arith.constant 0 : index
    %c0_0 = arith.constant 0 : index
    %0 = vector.load %arg1[%c0, %c0_0] : memref<256x32xbf16, #tpu.memory_space<vmem>>, vector<256x32xbf16>
    %c0_1 = arith.constant 0 : index
    %c0_2 = arith.constant 0 : index
    %1 = vector.load %arg2[%c0_1, %c0_2] : memref<32x8xbf16, #tpu.memory_space<vmem>>, vector<32x8xbf16>
    %cst = arith.constant dense<0.000000e+00> : vector<256x8xf32>
    %2 = tpu.matmul %0, %1, %cst {dimension_numbers = #tpu.dot_dimension_numbers<[1], [0], [0], [1], [0, 0, 1, 1], [], []>} : vector<256x32xbf16>, vector<32x8xbf16>, vector<256x8xf32> -> vector<256x8xf32>
    %c0_3 = arith.constant 0 : index
    %c0_4 = arith.constant 0 : index
    %3 = vector.load %arg3[%c0_3, %c0_4] : memref<1x8xf32, #tpu.memory_space<vmem>>, vector<1x8xf32>
    %4 = vector.broadcast %3 : vector<1x8xf32> to vector<256x8xf32>
    %5 = arith.addf %2, %4 : vector<256x8xf32>
    %6 = arith.truncf %5 : vector<256x8xf32> to vector<256x8xbf16>
    %c0_5 = arith.constant 0 : index
    %c0_6 = arith.constant 0 : index
    %7 = vector.load %arg4[%c0_5, %c0_6] : memref<256x8xbf16, #tpu.memory_space<vmem>>, vector<256x8xbf16>
    tpu.vector_store %arg4[%c0_5, %c0_6], %6 {strides = array<i32>} : memref<256x8xbf16, #tpu.memory_space<vmem>>, vector<256x8xbf16>,
    return
  }
  func.func @transform_0(%arg0: i32) -> (i32, i32) {
    %c0_i32 = arith.constant 0 : i32
    %c0_i32_0 = arith.constant 0 : i32
    return %arg0, %c0_i32 : i32, i32
  }
  func.func @transform_1(%arg0: i32) -> (i32, i32) {
    %c0_i32 = arith.constant 0 : i32
    %c0_i32_0 = arith.constant 0 : i32
    %c0_i32_1 = arith.constant 0 : i32
    return %c0_i32, %c0_i32_0 : i32, i32
  }
  func.func @transform_2(%arg0: i32) -> (i32, i32) {
    %c0_i32 = arith.constant 0 : i32
    %c0_i32_0 = arith.constant 0 : i32
    %c0_i32_1 = arith.constant 0 : i32
    return %c0_i32, %c0_i32_0 : i32, i32
  }
  func.func @transform_3(%arg0: i32) -> (i32, i32) {
    %c0_i32 = arith.constant 0 : i32
    %c0_i32_0 = arith.constant 0 : i32
    return %arg0, %c0_i32 : i32, i32
  }
}

</mosaic_0001>

<bundles_post_ra>
// kernel: tpu_custom_call.1
= control target key start
LH: loop header
LB: loop body
LE: loop exit
PB: predicated region body
PF: predicated region fallthrough
CT: control target
= control target key end

     0   :  { %s959_s12 = smov 0   ;;  %s1126_s0 = inlined_call_operand.vmem [shape: bf16[512,32], index: 0, kind: input, shape index: {}]   ;;  %s1127_s1 = inlined_call_operand.vmem [shape: bf16[32,8], index: 1, kind: input, shape index: {}]   ;;  %s1128_s2 = inlined_call_operand.vmem [shape: f32[1,8], index: 2, kind: input, shape index: {}]   ;;  %s1129_s3 = inlined_call_operand.vmem [shape: bf16[512,8], index: 3, kind: output, shape index: {}]  }
   0x1 LB: > { %s737_s13 = sadd.s32 4294967295, %s937_s12   ;;  %p741_p0 = scmp.ge.s32.totalorder %s937_s12, 1  ;;  %s937_s12 = sphi %s959_s12, %s13_s12  }
   0x2   : > { %p138_p1 = scmp.lt.s32.totalorder %s937_s12, 3 }
   0x4   : > { %p139_p2 = pnand %p741_p0, %p138_p1 }
   0x5   : > { %v913_v0 = vld [vmem:[%s1127_s1] sm:$0xff] (!%p139_p2)   ;;  %s742_s16 = sshll.u32 (!%p139_p2), %s737_s13, 5  ;;  %v914_v1 = vld [vmem:[%s1127_s1 + $0x8] sm:$0xff] (!%p139_p2)   ;;  %vm310_vm0 = vcmask (!%p139_p2), 261120   ;;  %vm648_vm1 = vcmask (!%p139_p2), 60416  }
   0x6   : > { %142 = sbr.rel (%p139_p2) target bundleno = 263 (0x107), region = 32  ;;  %p163_p3 = scmp.lt.s32.totalorder (!%p139_p2), %s742_s16, 63  ;;  %865 = vmatprep.subr.bf16.mxu0 (!%p139_p2), %v913_v0  ;;  %901 = vmatprep.subr.bf16.mxu1 (!%p139_p2), %v913_v0  ;;  %v1018_v18 = vld [vmem:[%s1128_s2] ss:$0 sm:$0xff] (!%p139_p2) }
   0x7   : > { %866 = vmatpush3.bf16.msra.mxu0 (!%p139_p2), %v913_v0  ;;  %903 = vmatpush3.bf16.msra.mxu1 (!%p139_p2), %v913_v0 }
   0x8   : > { %867 = vmatprep.subr.bf16.mxu0 (!%p139_p2), %v914_v1  ;;  %902 = vmatprep.subr.bf16.mxu1 (!%p139_p2), %v914_v1 }
   0xb   : > { %868 = vmatpush3.bf16.msra.mxu0 (!%p139_p2), %v914_v1  ;;  %904 = vmatpush3.bf16.msra.mxu1 (!%p139_p2), %v914_v1 }
   0xd   : > { %s1131_s16 = smov (!%p163_p3, %s742_s16), 63 }
   0xe   : > { %s743_s19 = sshll.u32 %s1131_s16, 2 }
   0xf   : > { %s981_s22 = scalar_lea.vmem %s1126_s0, %s743_s19  ;;  %s1026_s27 = scalar_lea.vmem %s1129_s3, %s743_s19 }
  0x10   : > { %v915_v2 = vld [vmem:[%s981_s22] sm:$0xff]   ;;  %v917_v4 = vld [vmem:[%s981_s22 + $0x8] sm:$0xff]   ;;  %v919_v6 = vld [vmem:[%s981_s22 + $0x10] sm:$0xff]  }
  0x11   : > { %v916_v3 = vld [vmem:[%s981_s22 + $0x40] sm:$0xff]   ;;  %869 = vmatprep.mubr.msk.bf16.mxu0 %vm310_vm0, %v915_v2  ;;  %v918_v5 = vld [vmem:[%s981_s22 + $0x48] sm:$0xff]   ;;  %v920_v7 = vld [vmem:[%s981_s22 + $0x50] sm:$0xff]  }
  0x12   : > { %885 = vmatprep.mubr.msk.bf16.mxu1 %vm310_vm0, %v916_v3  ;;  %870 = vmatmul.mubr.msk.bf16.vlgmr.msra.gmra.mrb[0].mxu0 %vm310_vm0, %v917_v4  ;;  %v921_v8 = vld [vmem:[%s981_s22 + $0x18] sm:$0xff]   ;;  %v923_v10 = vld [vmem:[%s981_s22 + $0x20] sm:$0xff]   ;;  %v925_v12 = vld [vmem:[%s981_s22 + $0x28] sm:$0xff]  }
  0x13   : > { %886 = vmatmul.mubr.msk.bf16.vlgmr.msra.gmra.mrb[0].mxu1 %vm310_vm0, %v918_v5  ;;  %873 = vmatprep.mubr.msk.bf16.mxu0 %vm310_vm0, %v919_v6  ;;  %v922_v9 = vld [vmem:[%s981_s22 + $0x58] sm:$0xff]   ;;  %v924_v11 = vld [vmem:[%s981_s22 + $0x60] sm:$0xff]   ;;  %v926_v13 = vld [vmem:[%s981_s22 + $0x68] sm:$0xff]  }
  0x14   : > { %889 = vmatprep.mubr.msk.bf16.mxu1 %vm310_vm0, %v920_v7  ;;  %v927_v14 = vld [vmem:[%s981_s22 + $0x30] sm:$0xff]   ;;  %v929_v16 = vld [vmem:[%s981_s22 + $0x38] sm:$0xff]  }
  0x15   : > { %v928_v15 = vld [vmem:[%s981_s22 + $0x70] sm:$0xff]   ;;  %v930_v17 = vld [vmem:[%s981_s22 + $0x78] sm:$0xff]  }
  0x1a   : > { %874 = vmatmul.mubr.msk.bf16.gmra.mrb[4].mxu0 %vm310_vm0, %v921_v8 }
  0x1b   : > { %890 = vmatmul.mubr.msk.bf16.gmra.mrb[4].mxu1 %vm310_vm0, %v922_v9  ;;  %877 = vmatprep.mubr.msk.bf16.mxu0 %vm310_vm0, %v923_v10 }
  0x1c   : > { %893 = vmatprep.mubr.msk.bf16.mxu1 %vm310_vm0, %v924_v11 }
  0x22   : > { %878 = vmatmul.mubr.msk.bf16.gmra.mrb[8].mxu0 %vm310_vm0, %v925_v12 }
  0x23   : > { %894 = vmatmul.mubr.msk.bf16.gmra.mrb[8].mxu1 %vm310_vm0, %v926_v13  ;;  %881 = vmatprep.mubr.msk.bf16.mxu0 %vm310_vm0, %v927_v14 }
  0x24   : > { %897 = vmatprep.mubr.msk.bf16.mxu1 %vm310_vm0, %v928_v15 }
  0x2a   : > { %882 = vmatmul.mubr.msk.bf16.gmra.mrb[12].mxu0 %vm310_vm0, %v929_v16 }
  0x2b   : > { %898 = vmatmul.mubr.msk.bf16.gmra.mrb[12].mxu1 %vm310_vm0, %v930_v17 }
  0xe5   : > { %v871_v19 = vpop.f32.mrb[0].mxu0 }
  0xe6   : > { %v402_v20 = vadd.f32 %v871_v19, %v1018_v18  ;;  %v887_v21 = vpop.f32.mrb[0].mxu1  ;;  %v393_v22 = vpop.f32.mrb[1].mxu0 }
  0xe7   : > { %v466_v23 = vadd.f32 %v887_v21, %v1018_v18  ;;  %v394_v24 = vadd.f32 %v1018_v18, %v393_v22  ;;  %v457_v25 = vpop.f32.mrb[1].mxu1  ;;  %v872_v26 = vpop.f32.mrb[2].mxu0 }
  0xe8   : > { %v817_v27 = vpack.c.bf16 %v402_v20, %v402_v20  ;;  %v458_v28 = vadd.f32 %v1018_v18, %v457_v25  ;;  %v405_v29 = vadd.f32 %v872_v26, %v1018_v18  ;;  %v888_v30 = vpop.f32.mrb[2].mxu1  ;;  %v396_v31 = vpop.f32.mrb[3].mxu0 }
  0xe9   : > { %v833_v32 = vpack.c.bf16 %v466_v23, %v466_v23  ;;  %v815_v33 = vpack.c.bf16 %v394_v24, %v394_v24  ;;  %v469_v34 = vadd.f32 %v888_v30, %v1018_v18  ;;  %v397_v35 = vadd.f32 %v1018_v18, %v396_v31  ;;  %v460_v36 = vpop.f32.mrb[3].mxu1 }
  0xea   : > { %651 = vst.msk [vmem:[%s1026_s27 + $0x8] sm:$0xf] %vm648_vm1, %v817_v27  ;;  %v831_v37 = vpack.c.bf16 %v458_v28, %v458_v28  ;;  %v818_v38 = vpack.c.bf16 %v405_v29, %v405_v29  ;;  %v461_v39 = vadd.f32 %v1018_v18, %v460_v36 }
  0xeb   : > { %667 = vst.msk [vmem:[%s1026_s27 + $0x48] sm:$0xf] %vm648_vm1, %v833_v32  ;;  %649 = vst.msk [vmem:[%s1026_s27] sm:$0xf] %vm648_vm1, %v815_v33  ;;  %v834_v40 = vpack.c.bf16 %v469_v34, %v469_v34  ;;  %v816_v41 = vpack.c.bf16 %v397_v35, %v397_v35 }
  0xec   : > { %665 = vst.msk [vmem:[%s1026_s27 + $0x40] sm:$0xf] %vm648_vm1, %v831_v37  ;;  %652 = vst.msk [vmem:[%s1026_s27 + $0xc] sm:$0xf] %vm648_vm1, %v818_v38  ;;  %v832_v42 = vpack.c.bf16 %v461_v39, %v461_v39 }
  0xed   : > { %668 = vst.msk [vmem:[%s1026_s27 + $0x4c] sm:$0xf] %vm648_vm1, %v834_v40  ;;  %650 = vst.msk [vmem:[%s1026_s27 + $0x4] sm:$0xf] %vm648_vm1, %v816_v41  ;;  %v875_v43 = vpop.f32.mrb[4].mxu0 }
  0xee   : > { %666 = vst.msk [vmem:[%s1026_s27 + $0x44] sm:$0xf] %vm648_vm1, %v832_v42  ;;  %v418_v44 = vadd.f32 %v875_v43, %v1018_v18  ;;  %v891_v45 = vpop.f32.mrb[4].mxu1  ;;  %v409_v46 = vpop.f32.mrb[5].mxu0 }
  0xef   : > { %v482_v47 = vadd.f32 %v891_v45, %v1018_v18  ;;  %v410_v48 = vadd.f32 %v1018_v18, %v409_v46  ;;  %v473_v49 = vpop.f32.mrb[5].mxu1  ;;  %v876_v50 = vpop.f32.mrb[6].mxu0 }
  0xf0   : > { %v821_v51 = vpack.c.bf16 %v418_v44, %v418_v44  ;;  %v474_v52 = vadd.f32 %v1018_v18, %v473_v49  ;;  %v421_v53 = vadd.f32 %v876_v50, %v1018_v18  ;;  %v892_v54 = vpop.f32.mrb[6].mxu1  ;;  %v412_v55 = vpop.f32.mrb[7].mxu0 }
  0xf1   : > { %v837_v56 = vpack.c.bf16 %v482_v47, %v482_v47  ;;  %v819_v57 = vpack.c.bf16 %v410_v48, %v410_v48  ;;  %v485_v58 = vadd.f32 %v892_v54, %v1018_v18  ;;  %v413_v59 = vadd.f32 %v1018_v18, %v412_v55  ;;  %v476_v60 = vpop.f32.mrb[7].mxu1 }
  0xf2   : > { %655 = vst.msk [vmem:[%s1026_s27 + $0x18] sm:$0xf] %vm648_vm1, %v821_v51  ;;  %v835_v61 = vpack.c.bf16 %v474_v52, %v474_v52  ;;  %v822_v62 = vpack.c.bf16 %v421_v53, %v421_v53  ;;  %v477_v63 = vadd.f32 %v1018_v18, %v476_v60 }
  0xf3   : > { %671 = vst.msk [vmem:[%s1026_s27 + $0x58] sm:$0xf] %vm648_vm1, %v837_v56  ;;  %653 = vst.msk [vmem:[%s1026_s27 + $0x10] sm:$0xf] %vm648_vm1, %v819_v57  ;;  %v838_v0 = vpack.c.bf16 %v485_v58, %v485_v58  ;;  %v820_v1 = vpack.c.bf16 %v413_v59, %v413_v59 }
  0xf4   : > { %669 = vst.msk [vmem:[%s1026_s27 + $0x50] sm:$0xf] %vm648_vm1, %v835_v61  ;;  %656 = vst.msk [vmem:[%s1026_s27 + $0x1c] sm:$0xf] %vm648_vm1, %v822_v62  ;;  %v836_v2 = vpack.c.bf16 %v477_v63, %v477_v63 }
  0xf5   : > { %672 = vst.msk [vmem:[%s1026_s27 + $0x5c] sm:$0xf] %vm648_vm1, %v838_v0  ;;  %654 = vst.msk [vmem:[%s1026_s27 + $0x14] sm:$0xf] %vm648_vm1, %v820_v1  ;;  %v879_v3 = vpop.f32.mrb[8].mxu0 }
  0xf6   : > { %670 = vst.msk [vmem:[%s1026_s27 + $0x54] sm:$0xf] %vm648_vm1, %v836_v2  ;;  %v434_v4 = vadd.f32 %v879_v3, %v1018_v18  ;;  %v895_v5 = vpop.f32.mrb[8].mxu1  ;;  %v425_v6 = vpop.f32.mrb[9].mxu0 }
  0xf7   : > { %v498_v7 = vadd.f32 %v895_v5, %v1018_v18  ;;  %v426_v8 = vadd.f32 %v1018_v18, %v425_v6  ;;  %v489_v9 = vpop.f32.mrb[9].mxu1  ;;  %v880_v10 = vpop.f32.mrb[10].mxu0 }
  0xf8   : > { %v825_v11 = vpack.c.bf16 %v434_v4, %v434_v4  ;;  %v490_v12 = vadd.f32 %v1018_v18, %v489_v9  ;;  %v437_v13 = vadd.f32 %v880_v10, %v1018_v18  ;;  %v896_v14 = vpop.f32.mrb[10].mxu1  ;;  %v428_v15 = vpop.f32.mrb[11].mxu0 }
  0xf9   : > { %v841_v16 = vpack.c.bf16 %v498_v7, %v498_v7  ;;  %v823_v17 = vpack.c.bf16 %v426_v8, %v426_v8  ;;  %v501_v19 = vadd.f32 %v896_v14, %v1018_v18  ;;  %v429_v20 = vadd.f32 %v1018_v18, %v428_v15  ;;  %v492_v21 = vpop.f32.mrb[11].mxu1 }
  0xfa   : > { %659 = vst.msk [vmem:[%s1026_s27 + $0x28] sm:$0xf] %vm648_vm1, %v825_v11  ;;  %v839_v22 = vpack.c.bf16 %v490_v12, %v490_v12  ;;  %v826_v23 = vpack.c.bf16 %v437_v13, %v437_v13  ;;  %v493_v24 = vadd.f32 %v1018_v18, %v492_v21 }
  0xfb   : > { %675 = vst.msk [vmem:[%s1026_s27 + $0x68] sm:$0xf] %vm648_vm1, %v841_v16  ;;  %657 = vst.msk [vmem:[%s1026_s27 + $0x20] sm:$0xf] %vm648_vm1, %v823_v17  ;;  %v842_v25 = vpack.c.bf16 %v501_v19, %v501_v19  ;;  %v824_v26 = vpack.c.bf16 %v429_v20, %v429_v20 }
  0xfc   : > { %673 = vst.msk [vmem:[%s1026_s27 + $0x60] sm:$0xf] %vm648_vm1, %v839_v22  ;;  %660 = vst.msk [vmem:[%s1026_s27 + $0x2c] sm:$0xf] %vm648_vm1, %v826_v23  ;;  %v840_v27 = vpack.c.bf16 %v493_v24, %v493_v24 }
  0xfd   : > { %676 = vst.msk [vmem:[%s1026_s27 + $0x6c] sm:$0xf] %vm648_vm1, %v842_v25  ;;  %658 = vst.msk [vmem:[%s1026_s27 + $0x24] sm:$0xf] %vm648_vm1, %v824_v26  ;;  %v883_v28 = vpop.f32.mrb[12].mxu0 }
  0xfe   : > { %674 = vst.msk [vmem:[%s1026_s27 + $0x64] sm:$0xf] %vm648_vm1, %v840_v27  ;;  %v450_v29 = vadd.f32 %v883_v28, %v1018_v18  ;;  %v899_v30 = vpop.f32.mrb[12].mxu1  ;;  %v441_v31 = vpop.f32.mrb[13].mxu0 }
  0xff   : > { %v514_v32 = vadd.f32 %v899_v30, %v1018_v18  ;;  %v442_v33 = vadd.f32 %v1018_v18, %v441_v31  ;;  %v505_v34 = vpop.f32.mrb[13].mxu1  ;;  %v884_v35 = vpop.f32.mrb[14].mxu0 }
 0x100   : > { %v829_v36 = vpack.c.bf16 %v450_v29, %v450_v29  ;;  %v506_v37 = vadd.f32 %v1018_v18, %v505_v34  ;;  %v453_v38 = vadd.f32 %v884_v35, %v1018_v18  ;;  %v900_v39 = vpop.f32.mrb[14].mxu1  ;;  %v444_v40 = vpop.f32.mrb[15].mxu0 }
 0x101   : > { %v845_v41 = vpack.c.bf16 %v514_v32, %v514_v32  ;;  %v827_v42 = vpack.c.bf16 %v442_v33, %v442_v33  ;;  %v517_v43 = vadd.f32 %v900_v39, %v1018_v18  ;;  %v445_v44 = vadd.f32 %v1018_v18, %v444_v40  ;;  %v508_v45 = vpop.f32.mrb[15].mxu1 }
 0x102   : > { %663 = vst.msk [vmem:[%s1026_s27 + $0x38] sm:$0xf] %vm648_vm1, %v829_v36  ;;  %v843_v46 = vpack.c.bf16 %v506_v37, %v506_v37  ;;  %v830_v47 = vpack.c.bf16 %v453_v38, %v453_v38  ;;  %v509_v48 = vadd.f32 %v1018_v18, %v508_v45 }
 0x103   : > { %679 = vst.msk [vmem:[%s1026_s27 + $0x78] sm:$0xf] %vm648_vm1, %v845_v41  ;;  %661 = vst.msk [vmem:[%s1026_s27 + $0x30] sm:$0xf] %vm648_vm1, %v827_v42  ;;  %v846_v49 = vpack.c.bf16 %v517_v43, %v517_v43  ;;  %v828_v50 = vpack.c.bf16 %v445_v44, %v445_v44 }
 0x104   : > { %677 = vst.msk [vmem:[%s1026_s27 + $0x70] sm:$0xf] %vm648_vm1, %v843_v46  ;;  %664 = vst.msk [vmem:[%s1026_s27 + $0x3c] sm:$0xf] %vm648_vm1, %v830_v47  ;;  %v844_v51 = vpack.c.bf16 %v509_v48, %v509_v48 }
 0x105   : > { %680 = vst.msk [vmem:[%s1026_s27 + $0x7c] sm:$0xf] %vm648_vm1, %v846_v49  ;;  %662 = vst.msk [vmem:[%s1026_s27 + $0x34] sm:$0xf] %vm648_vm1, %v828_v50 }
 0x106   : > { %678 = vst.msk [vmem:[%s1026_s27 + $0x74] sm:$0xf] %vm648_vm1, %v844_v51 }
 0x107 PF: > { %s13_s12 = sadd.s32 1, %s937_s12  }
 0x108   : > { %p10_p4 = scmp.ge.s32.totalorder %s13_s12, 4  }
 0x10a   :  { %12 = sbr.rel (!%p10_p4) target bundleno = 1 (0x1), region = 62 }

</bundles_post_ra>
